<compile_context>
chip_gen: v7x
topology: tpu7x:2x2x1
jax: 0.10.0
libtpu: 0.0.40
codegen_flags: <defaults>
</compile_context>

<pallas_src>
import functools
import math

import jax
import jax.numpy as jnp
from jax import lax
from jax.experimental import pallas as pl
from jax.experimental.pallas import tpu as pltpu


def _round_up(x, m):
    return ((x + m - 1) // m) * m


def _vmem_capacity_bytes():
    try:
        info = pltpu.get_tpu_info()
        cap = getattr(info, "vmem_capacity_bytes", None)
        if cap:
            return int(cap)
    except Exception:
        pass
    return 64 * 1024 * 1024  # conservative fallback (v7x per-core VMEM)


def _choose_tile_lanes(c, l, itemsize, buf_budget):
    """Lane-tile for native (N, C, L) layout (classes on sublanes)."""
    c_sub = _round_up(c, 8)
    # double-buffered logits tile + double-buffered (1, tl) int32 target tile
    per_lane = 2 * (c_sub * itemsize + 8 * 4)
    max_tl = min(max(buf_budget // per_lane, 128), 32768)
    if l <= max_tl:
        return int(l)                      # full extent -> always a legal block
    return int(max((max_tl // 128) * 128, 128))


def _choose_tile_rows(c, m, itemsize, buf_budget):
    """Row-tile for (M, C) layout (classes on lanes)."""
    c_lane = _round_up(c, 128)             # physical VMEM lane footprint
    per_row = 2 * (c_lane * itemsize + 128 * 4)
    max_tm = min(max(buf_budget // per_row, 8), 8192)
    tm = min((max_tm // 8) * 8, _round_up(m, 8))
    return int(max(tm, 8))


# ------------------------------ Pallas kernels ------------------------------

def _ce_classes_on_sublanes_kernel(logits_ref, tgt_ref, out_ref, *, n_lanes,
                                   tile_l):
    """Native (N, C, L) layout: classes on sublanes, positions on lanes."""
    x = logits_ref[...].astype(jnp.float32)          # (C, tl)
    t = tgt_ref[...]                                  # (1, tl) int32
    c, tl = x.shape

    cls = lax.broadcasted_iota(jnp.int32, (c, tl), 0)         # class ids
    row_max = jnp.max(x, axis=0, keepdims=True)                # (1, tl)
    ex = jnp.exp(x - row_max)                                  # EUP
    lse = row_max + jnp.log(jnp.sum(ex, axis=0, keepdims=True))

    # Vectorized "gather" of the target logit per position.
    picked = jnp.sum(jnp.where(cls == t, x, 0.0), axis=0, keepdims=True)

    # Mask lanes past the true spatial extent (partial edge block).
    pos = pl.program_id(1) * tile_l + lax.broadcasted_iota(jnp.int32, (1, tl), 1)
    loss = jnp.where(pos < n_lanes, lse - picked, 0.0)          # (1, tl)

    out_ref[...] = jnp.sum(loss, axis=(0, 1), keepdims=True)    # (1, 1) partial


def _ce_classes_on_lanes_kernel(logits_ref, tgt_ref, out_ref, *, n_rows,
                                tile_m):
    """Flat (M, C) layout: classes on lanes (2-D input path)."""
    x = logits_ref[...].astype(jnp.float32)          # (tm, C)
    t = tgt_ref[...]                                  # (tm, 1) int32
    tm, c = x.shape

    col = lax.broadcasted_iota(jnp.int32, (tm, c), 1)
    row_max = jnp.max(x, axis=1, keepdims=True)
    ex = jnp.exp(x - row_max)
    lse = row_max + jnp.log(jnp.sum(ex, axis=1, keepdims=True))

    picked = jnp.sum(jnp.where(col == t, x, 0.0), axis=1, keepdims=True)

    row = pl.program_id(0) * tile_m + lax.broadcasted_iota(jnp.int32, (tm, 1), 0)
    loss = jnp.where(row < n_rows, lse - picked, 0.0)            # (tm, 1)

    out_ref[...] = jnp.sum(loss, axis=(0, 1), keepdims=True)     # (1, 1) partial


# ------------------------------- JAX wrapper ---------------------------------

def softmax_cross_entropy_loss(inputs, target, nbclasses):
    inputs = jnp.asarray(inputs)
    target = jnp.asarray(target, jnp.int32)

    vmem_cap = _vmem_capacity_bytes()
    vmem_limit = int(vmem_cap // 2)          # scoped limit (64MiB v5e/v6e, 32MiB v7x)
    buf_budget = int(vmem_limit // 2)        # headroom for compiler temporaries
    itemsize = int(jnp.dtype(inputs.dtype).itemsize)

    if inputs.ndim > 2:
        # Native layout: no transpose, no class padding in HBM.
        n, c = int(inputs.shape[0]), int(inputs.shape[1])
        assert c == nbclasses
        l = int(math.prod(inputs.shape[2:]))
        logits = inputs.reshape(n, c, l)               # (N, C, L)
        tgt = target.reshape(n, 1, l)                  # lane-dense targets
        m = n * l

        tl = _choose_tile_lanes(c, l, itemsize, buf_budget)
        n_l = pl.cdiv(l, tl)
        grid = (n, n_l)

        kernel = functools.partial(
            _ce_classes_on_sublanes_kernel, n_lanes=l, tile_l=tl)

        cost = pl.CostEstimate(
            flops=6 * m * c,
            transcendentals=m * c + m,
            bytes_accessed=m * c * itemsize + m * 4 + n * n_l * 4,
        )

        partials = pl.pallas_call(
            kernel,
            grid=grid,
            in_specs=[
                pl.BlockSpec((None, c, tl), lambda b, j: (b, 0, j)),   # logits
                pl.BlockSpec((None, 1, tl), lambda b, j: (b, 0, j)),   # targets
            ],
            out_specs=pl.BlockSpec((None, 1, 1),
                                   lambda b, j: (b * n_l + j, 0, 0)),
            out_shape=jax.ShapeDtypeStruct((n * n_l, 1, 1), jnp.float32),
            compiler_params=pltpu.CompilerParams(
                dimension_semantics=("parallel", "parallel"),
                vmem_limit_bytes=vmem_limit,
            ),
            cost_estimate=cost,
        )(logits, tgt)
    else:
        # 2-D path: classes already on lanes, no padding, partial edge blocks.
        logits = inputs.reshape(-1, nbclasses)
        tgt = target.reshape(-1, 1)
        m, c = int(logits.shape[0]), int(logits.shape[1])

        tm = _choose_tile_rows(c, m, itemsize, buf_budget)
        g = pl.cdiv(m, tm)

        kernel = functools.partial(
            _ce_classes_on_lanes_kernel, n_rows=m, tile_m=tm)

        cost = pl.CostEstimate(
            flops=6 * m * c,
            transcendentals=m * c + m,
            bytes_accessed=m * c * itemsize + m * 4 + g * 4,
        )

        partials = pl.pallas_call(
            kernel,
            grid=(g,),
            in_specs=[
                pl.BlockSpec((tm, c), lambda i: (i, 0)),      # logits tile
                pl.BlockSpec((tm, 1), lambda i: (i, 0)),      # target tile
            ],
            out_specs=pl.BlockSpec((None, 1, 1), lambda i: (i, 0, 0)),
            out_shape=jax.ShapeDtypeStruct((g, 1, 1), jnp.float32),
            compiler_params=pltpu.CompilerParams(
                dimension_semantics=("parallel",),
                vmem_limit_bytes=vmem_limit,
            ),
            cost_estimate=cost,
        )(logits, tgt)

    return jnp.sum(partials) / jnp.float32(m)


# ------------------------------ pure-JAX check -------------------------------

def reference_loss(inputs, target, nbclasses):
    inputs = jnp.asarray(inputs, jnp.float32)
    target = jnp.asarray(target, jnp.int32)
    if inputs.ndim > 2:
        n, c = inputs.shape[0], inputs.shape[1]
        logits = inputs.reshape(n, c, -1)
        logits = jnp.transpose(logits, (0, 2, 1)).reshape(-1, nbclasses)
    else:
        logits = inputs.reshape(-1, nbclasses)
    tgt = target.reshape(-1)
    logp = jax.nn.log_softmax(logits, axis=-1)
    nll = -jnp.take_along_axis(logp, tgt[:, None], axis=-1)[:, 0]
    return jnp.mean(nll)


# ----------------------------------- main -------------------------------------

if __name__ == "__main__":
    nbclasses = 10
    N, C, H, W = 2, nbclasses, 16, 16          # M = N*H*W = 512 rows

    key = jax.random.PRNGKey(0)
    kx, kt = jax.random.split(key)
    x = jax.random.normal(kx, (N, C, H, W), dtype=jnp.float32)       # NCHW logits
    target = jax.random.randint(kt, (N, H, W), 0, nbclasses, dtype=jnp.int32)

    loss = jax.block_until_ready(softmax_cross_entropy_loss(x, target, nbclasses))
    ref = jax.block_until_ready(reference_loss(x, target, nbclasses))
    err = abs(float(loss) - float(ref))
    assert err < 1e-4, f"4-D path abs error {err} (got {float(loss)}, want {float(ref)})"

    # Also exercise the 2-D input path.
    x2 = jax.random.normal(kx, (256, nbclasses), dtype=jnp.float32)
    t2 = jax.random.randint(kt, (256,), 0, nbclasses, dtype=jnp.int32)
    loss2 = jax.block_until_ready(softmax_cross_entropy_loss(x2, t2, nbclasses))
    ref2 = jax.block_until_ready(reference_loss(x2, t2, nbclasses))
    err2 = abs(float(loss2) - float(ref2))
    assert err2 < 1e-4, f"2-D path abs error {err2} (got {float(loss2)}, want {float(ref2)})"

    print("KERNEL_OK")
</pallas_src>

<mosaic_0001>
module attributes {stable_mosaic.version = 11 : i64} {
  func.func @_ce_classes_on_sublanes_kernel(%arg0: i32, %arg1: i32, %arg2: memref<1x10x256xf32, #tpu.memory_space<vmem>>, %arg3: memref<1x1x256xi32, #tpu.memory_space<vmem>>, %arg4: memref<1x1x1xf32, #tpu.memory_space<vmem>>) attributes {dimension_semantics = [#tpu.dimension_semantics<parallel>, #tpu.dimension_semantics<parallel>], iteration_bounds = array<i64: 2, 1>, scalar_prefetch = 0 : i64, scratch_operands = 0 : i64, tpu.core_type = #tpu.core_type<tc>, window_params = [{transform_indices = @transform_0, window_bounds = array<i64: 1, 10, 256>}, {transform_indices = @transform_1, window_bounds = array<i64: 1, 1, 256>}, {transform_indices = @transform_2, window_bounds = array<i64: 1, 1, 1>}]} {
    %c0 = arith.constant 0 : index
    %c0_0 = arith.constant 0 : index
    %c0_1 = arith.constant 0 : index
    %0 = vector.load %arg2[%c0, %c0_0, %c0_1] : memref<1x10x256xf32, #tpu.memory_space<vmem>>, vector<1x10x256xf32>
    %1 = vector.shape_cast %0 : vector<1x10x256xf32> to vector<10x256xf32>
    %c0_2 = arith.constant 0 : index
    %c0_3 = arith.constant 0 : index
    %c0_4 = arith.constant 0 : index
    %2 = vector.load %arg3[%c0_2, %c0_3, %c0_4] : memref<1x1x256xi32, #tpu.memory_space<vmem>>, vector<1x1x256xi32>
    %3 = vector.shape_cast %2 : vector<1x1x256xi32> to vector<1x256xi32>
    %4 = tpu.iota {dimensions = array<i32: 0>} : vector<10x256xi32>
    %cst = arith.constant dense<0xFF800000> : vector<256xf32>
    %5 = vector.multi_reduction <maximumf>, %1, %cst [0] : vector<10x256xf32> to vector<256xf32>
    %6 = vector.shape_cast %5 : vector<256xf32> to vector<1x256xf32>
    %7 = vector.broadcast %6 : vector<1x256xf32> to vector<10x256xf32>
    %8 = arith.subf %1, %7 : vector<10x256xf32>
    %9 = math.exp %8 : vector<10x256xf32>
    %cst_5 = arith.constant dense<0.000000e+00> : vector<256xf32>
    %10 = vector.multi_reduction <add>, %9, %cst_5 [0] : vector<10x256xf32> to vector<256xf32>
    %11 = vector.shape_cast %10 : vector<256xf32> to vector<1x256xf32>
    %12 = math.log %11 : vector<1x256xf32>
    %13 = arith.addf %6, %12 : vector<1x256xf32>
    %14 = vector.broadcast %3 : vector<1x256xi32> to vector<10x256xi32>
    %15 = arith.cmpi eq, %4, %14 : vector<10x256xi32>
    %cst_6 = arith.constant 0.000000e+00 : f32
    %16 = vector.broadcast %cst_6 : f32 to vector<10x256xf32>
    %17 = arith.select %15, %1, %16 : vector<10x256xi1>, vector<10x256xf32>
    %cst_7 = arith.constant dense<0.000000e+00> : vector<256xf32>
    %18 = vector.multi_reduction <add>, %17, %cst_7 [0] : vector<10x256xf32> to vector<256xf32>
    %19 = vector.shape_cast %18 : vector<256xf32> to vector<1x256xf32>
    %c256_i32 = arith.constant 256 : i32
    %20 = arith.muli %arg1, %c256_i32 : i32
    %21 = tpu.iota {dimensions = array<i32: 1>} : vector<1x256xi32>
    %22 = vector.broadcast %20 : i32 to vector<1x256xi32>
    %23 = arith.addi %22, %21 : vector<1x256xi32>
    %c256_i32_8 = arith.constant 256 : i32
    %24 = vector.broadcast %c256_i32_8 : i32 to vector<1x256xi32>
    %25 = arith.cmpi slt, %23, %24 : vector<1x256xi32>
    %26 = arith.subf %13, %19 : vector<1x256xf32>
    %cst_9 = arith.constant 0.000000e+00 : f32
    %27 = vector.broadcast %cst_9 : f32 to vector<1x256xf32>
    %28 = arith.select %25, %26, %27 : vector<1x256xi1>, vector<1x256xf32>
    %29 = vector.shape_cast %28 : vector<1x256xf32> to vector<1x1x256xf32>
    %cst_10 = arith.constant dense<0.000000e+00> : vector<1xf32>
    %30 = vector.multi_reduction <add>, %29, %cst_10 [1, 2] : vector<1x1x256xf32> to vector<1xf32>
    %31 = vector.shape_cast %30 : vector<1xf32> to vector<1x1x1xf32>
    %32 = vector.extract %31[0, 0, 0] : f32 from vector<1x1x1xf32>
    %33 = vector.broadcast %32 : f32 to vector<1x1xf32>
    %c0_11 = arith.constant 0 : index
    %c0_12 = arith.constant 0 : index
    %c0_13 = arith.constant 0 : index
    %34 = vector.load %arg4[%c0_11, %c0_12, %c0_13] : memref<1x1x1xf32, #tpu.memory_space<vmem>>, vector<1x1x1xf32>
    %35 = vector.shape_cast %34 : vector<1x1x1xf32> to vector<1x1xf32>
    %36 = vector.shape_cast %33 : vector<1x1xf32> to vector<1x1x1xf32>
    tpu.vector_store %arg4[%c0_11, %c0_12, %c0_13], %36 {strides = array<i32>} : memref<1x1x1xf32, #tpu.memory_space<vmem>>, vector<1x1x1xf32>,
    return
  }
  func.func @transform_0(%arg0: i32, %arg1: i32) -> (i32, i32, i32) {
    %c0_i32 = arith.constant 0 : i32
    %c0_i32_0 = arith.constant 0 : i32
    return %arg0, %c0_i32, %arg1 : i32, i32, i32
  }
  func.func @transform_1(%arg0: i32, %arg1: i32) -> (i32, i32, i32) {
    %c0_i32 = arith.constant 0 : i32
    %c0_i32_0 = arith.constant 0 : i32
    return %arg0, %c0_i32, %arg1 : i32, i32, i32
  }
  func.func @transform_2(%arg0: i32, %arg1: i32) -> (i32, i32, i32) {
    %c1_i32 = arith.constant 1 : i32
    %0 = arith.muli %arg0, %c1_i32 : i32
    %1 = arith.addi %0, %arg1 : i32
    %c0_i32 = arith.constant 0 : i32
    %c0_i32_0 = arith.constant 0 : i32
    %c0_i32_1 = arith.constant 0 : i32
    return %1, %c0_i32, %c0_i32_0 : i32, i32, i32
  }
}

</mosaic_0001>

<bundles_post_ra>
// kernel: tpu_custom_call.1
= control target key start
LH: loop header
LB: loop body
LE: loop exit
PB: predicated region body
PF: predicated region fallthrough
CT: control target
= control target key end

     0   :  { %s494_s9 = smov 0   ;;  %s496_s10 = smov 0   ;;  %s551_s0 = inlined_call_operand.vmem [shape: f32[2,10,256], index: 0, kind: input, shape index: {}]   ;;  %s552_s1 = inlined_call_operand.vmem [shape: s32[2,1,256], index: 1, kind: input, shape index: {}]   ;;  %s553_s2 = inlined_call_operand.vmem [shape: f32[2,1,1], index: 2, kind: output, shape index: {}]  }
   0x1   :  { %s498_s11 = smov 0  }
   0x2 LB: > { %s24_s12 = sadd.s32 1, %s473_s10  ;;  %p410_p0 = scmp.ge.s32.totalorder %s477_s11, 1  ;;  %s477_s11 = sphi %s498_s11, %s12_s11   ;;  %s473_s10 = sphi %s496_s10, %s555_s10   ;;  %s469_s9 = sphi %s494_s9, %s554_s9  }
   0x3   : > { %p26_p1 = scmp.ge.s32.totalorder %s24_s12, 2  ;;  %p149_p2 = scmp.lt.s32.totalorder %s477_s11, 3 }
   0x5   : > { %s557_s12 = smov (%p26_p1, %s24_s12), 0  ;;  %p150_p3 = pnand %p410_p0, %p149_p2 }
   0x6   : > { %p183_p4 = scmp.lt.s32.totalorder (!%p150_p3), %s469_s9, 1  ;;  %vm214_vm0 = vcmask (!%p150_p3), 1041408   ;;  %v211_v14 = vlaneseq (!%p150_p3)  ;;  %vm310_vm5 = vcmask (!%p150_p3), 1040384   ;;  %vm324_vm6 = vcmask (!%p150_p3), 0  }
   0x7   : > { %153 = sbr.rel (%p150_p3) target bundleno = 292 (0x124), region = 28 }
   0x8   : > { %v212_v19 = vshrl.u32 (!%p150_p3), %v211_v14, 7 }
   0xa   : > { %v267_v28 = vsub.s32 (!%p150_p3), 0, %v212_v19  ;;  %v271_v29 = vsub.s32 (!%p150_p3), 1, %v212_v19  ;;  %v213_v33 = vadd.s32 (!%p150_p3), 8, %v212_v19 }
   0xe   : > { %s559_s9 = smov (!%p183_p4, %s469_s9), 1 }
   0xf   : > { %s416_s13 = sshll.u32 %s559_s9, 5  ;;  %s413_s17 = sshll.u32 %s559_s9, 1 }
  0x10   : > { %s190_s16 = scalar_lea.vmem %s551_s0, %s416_s13  ;;  %s199_s20 = scalar_lea.vmem %s552_s1, %s413_s17 }
  0x11   : > { %v206_v0 = vld [vmem:[%s190_s16] sm:$0xff]  ;;  %v207_v1 = vld [vmem:[%s190_s16 + $0x8] sm:$0xff]  ;;  %v208_v2 = vld [vmem:[%s190_s16 + $0x10] sm:$0x3]  ;;  %s204_s23 = scalar_lea.vmem %s553_s2, %s559_s9 }
  0x12   : > { %v209_v3 = vld [vmem:[%s190_s16 + $0x18] sm:$0x3]  ;;  %v215_v4 = vsel %vm214_vm0, %v208_v2, -inf  ;;  %v210_v30 = vld [vmem:[%s199_s20] sm:$0x3] }
  0x13   : > { %v216_v5 = vmax.f32 %v206_v0, %v215_v4  ;;  %v223_v6 = vsel %vm214_vm0, %v209_v3, -inf  ;;  %v268_v34 = vrot.slane %v210_v30, %v267_v28  ;;  %v272_v35 = vrot.slane %v210_v30, %v271_v29 }
  0x14   : > { %v224_v7 = vmax.f32 %v207_v1, %v223_v6 }
  0x15   : > { %v217_v8 = vrot.slane %v216_v5, 4  ;;  %vm275_vm1 = vcmp.eq.s32.totalorder %v213_v33, %v268_v34  ;;  %vm276_vm2 = vcmp.eq.s32.totalorder %v213_v33, %v272_v35  ;;  %vm273_vm3 = vcmp.eq.s32.totalorder %v212_v19, %v268_v34 }
  0x16   : > { %v225_v9 = vrot.slane %v224_v7, 4  ;;  %v279_v36 = vsel %vm275_vm1, %v208_v2, 0.0  ;;  %vm274_vm4 = vcmp.eq.s32.totalorder %v212_v19, %v272_v35  ;;  %v280_v38 = vsel %vm276_vm2, %v209_v3, 0.0 }
  0x17   : > { %v218_v10 = vmax.f32 %v216_v5, %v217_v8  ;;  %v277_v41 = vsel %vm273_vm3, %v206_v0, 0.0  ;;  %v281_v42 = vsel %vm214_vm0, %v279_v36, 0.0  ;;  %v278_v45 = vsel %vm274_vm4, %v207_v1, 0.0 }
  0x18   : > { %v226_v11 = vmax.f32 %v224_v7, %v225_v9  ;;  %v289_v46 = vsel %vm214_vm0, %v280_v38, 0.0  ;;  %v282_v50 = vadd.f32 %v281_v42, %v277_v41 }
  0x19   : > { %v219_v12 = vrot.slane %v218_v10, 2  ;;  %v290_v52 = vadd.f32 %v289_v46, %v278_v45 }
  0x1a   : > { %v227_v13 = vrot.slane %v226_v11, 2  ;;  %v283_v56 = vrot.slane %v282_v50, 4 }
  0x1b   : > { %v220_v15 = vmax.f32 %v218_v10, %v219_v12  ;;  %v291_v58 = vrot.slane %v290_v52, 4 }
  0x1c   : > { %v228_v16 = vmax.f32 %v226_v11, %v227_v13  ;;  %v284_v62 = vadd.f32 %v283_v56, %v282_v50 }
  0x1d   : > { %v221_v17 = vrot.slane %v220_v15, 1 }
  0x1e   : > { %v229_v18 = vrot.slane %v228_v16, 1  ;;  %v285_v4 = vrot.slane %v284_v62, 2 }
  0x1f   : > { %v521_v20 = vmax.f32 %v220_v15, %v221_v17 }
  0x20   : > { %v523_v21 = vmax.f32 %v228_v16, %v229_v18  ;;  %v286_v6 = vadd.f32 %v285_v4, %v284_v62 }
  0x21   : > { %v231_v22 = vsub.f32 %v206_v0, %v521_v20  ;;  %v233_v23 = vsub.f32 %v208_v2, %v521_v20  ;;  %v292_v0 = vadd.f32 %v291_v58, %v290_v52 }
  0x22   : > { %v232_v24 = vsub.f32 %v207_v1, %v523_v21  ;;  %v234_v25 = vsub.f32 %v209_v3, %v523_v21  ;;  %v287_v8 = vrot.slane %v286_v6, 1 }
  0x23   : > { %v235_v26 = vmul.f32 1.442695, %v231_v22  ;;  %v239_v27 = vmul.f32 1.442695, %v233_v23  ;;  %v293_v5 = vrot.slane %v292_v0, 2 }
  0x24   : > { %v237_v31 = vmul.f32 1.442695, %v232_v24  ;;  %v241_v32 = vmul.f32 1.442695, %v234_v25  ;;  %v288_v13 = vadd.f32 %v287_v8, %v286_v6 }
  0x25   : > { %443 = vpow2.f32 %v235_v26  ;;  %v294_v7 = vadd.f32 %v293_v5, %v292_v0 }
  0x26   : > { %445 = vpow2.f32 %v237_v31 }
  0x27   : > { %447 = vpow2.f32 %v239_v27  ;;  %v295_v9 = vrot.slane %v294_v7, 1 }
  0x28   : > { %449 = vpow2.f32 %v241_v32 }
  0x29   : > { %v296_v15 = vadd.f32 %v295_v9, %v294_v7 }
  0x2f   : > { %v444_v37 = vpop.eup %443 }
  0x30   : > { %v446_v39 = vpop.eup %445 }
  0x31   : > { %v448_v40 = vpop.eup %447 }
  0x32   : > { %v450_v43 = vpop.eup %449  ;;  %v243_v44 = vsel %vm214_vm0, %v448_v40, 0.0 }
  0x33   : > { %v244_v47 = vadd.f32 %v444_v37, %v243_v44  ;;  %v251_v48 = vsel %vm214_vm0, %v450_v43, 0.0 }
  0x34   : > { %v252_v49 = vadd.f32 %v446_v39, %v251_v48 }
  0x35   : > { %v245_v51 = vrot.slane %v244_v47, 4 }
  0x36   : > { %v253_v53 = vrot.slane %v252_v49, 4 }
  0x37   : > { %v246_v54 = vadd.f32 %v245_v51, %v244_v47 }
  0x38   : > { %v254_v55 = vadd.f32 %v253_v53, %v252_v49 }
  0x39   : > { %v247_v57 = vrot.slane %v246_v54, 2 }
  0x3a   : > { %v255_v59 = vrot.slane %v254_v55, 2 }
  0x3b   : > { %v248_v60 = vadd.f32 %v247_v57, %v246_v54 }
  0x3c   : > { %v256_v61 = vadd.f32 %v255_v59, %v254_v55 }
  0x3d   : > { %v249_v63 = vrot.slane %v248_v60, 1 }
  0x3e   : > { %v257_v1 = vrot.slane %v256_v61, 1 }
  0x3f   : > { %v250_v2 = vadd.f32 %v249_v63, %v248_v60 }
  0x40   : > { %v258_v3 = vadd.f32 %v257_v1, %v256_v61 }
  0x41   : > { %451 = vlog2.f32 %v250_v2 }
  0x42   : > { %453 = vlog2.f32 %v258_v3 }
  0x4b   : > { %v452_v10 = vpop.eup %451 }
  0x4c   : > { %v454_v11 = vpop.eup %453  ;;  %v260_v12 = vmul.f32 0.6931472, %v452_v10 }
  0x4d   : > { %v262_v14 = vmul.f32 0.6931472, %v454_v11 }
  0x4e   : > { %v263_v16 = vadd.f32 %v260_v12, %v521_v20 }
  0x4f   : > { %v264_v17 = vadd.f32 %v262_v14, %v523_v21 }
  0x50   : > { %v306_v18 = vsub.f32 %v263_v16, %v288_v13 }
  0x51   : > { %v307_v19 = vsub.f32 %v264_v17, %v296_v15 }
  0x52   : > { %v311_v22 = vsel %vm310_vm5, %v306_v18, 0.0 }
  0x53   : > { %v312_v23 = vsel %vm310_vm5, %v307_v19, 0.0 }
  0x54   : > { %v313_v24 = vadd.f32 %v312_v23, %v311_v22 }
  0x56   : > { %314 = vadd.xlane.f32.xlu0 %v313_v24 }
  0xe3   : > { %v315_v25 = vpop.xlane.xlu0 %314 }
  0xe4   : > { %v316_v26 = vrot.slane %v315_v25, 4 }
  0xe6   : > { %v317_v27 = vadd.f32 %v316_v26, %v315_v25 }
  0xe8   : > { %v318_v28 = vrot.slane %v317_v27, 2 }
  0xea   : > { %v319_v29 = vadd.f32 %v318_v28, %v317_v27 }
  0xec   : > { %v320_v30 = vrot.slane %v319_v29, 1 }
  0xee   : > { %v321_v31 = vadd.f32 %v320_v30, %v319_v29 }
  0xf0   : > { %417 = vpush %v321_v31 }
 0x121   : > { %s418_s24 = spop %417 }
 0x122   : > { %v323_v20 = vstv %s418_s24 }
 0x123   : > { %325 = vst.msk [vmem:[%s204_s23] sm:$0x1] %vm324_vm6, %v323_v20 }
 0x124 PF: > { %s12_s11 = sadd.s32 1, %s477_s11   ;;  %s554_s9 = smov %s473_s10 }
 0x125   : > { %p9_p5 = scmp.ge.s32.totalorder %s12_s11, 4   ;;  %s555_s10 = smov %s557_s12 }
 0x127   :  { %11 = sbr.rel (!%p9_p5) target bundleno = 2 (0x2), region = 61 }

</bundles_post_ra>
